<compile_context>
chip_gen: v5e
topology: v5e:2x2
jax: 0.10.0
libtpu: 0.0.40
codegen_flags: <defaults>
</compile_context>

<pallas_src>
import functools

import numpy as np
import jax
import jax.numpy as jnp
from jax import lax
from jax.experimental import pallas as pl
from jax.experimental.pallas import tpu as pltpu


def _round_up(x: int, m: int) -> int:
    return ((x + m - 1) // m) * m


def _vmem_capacity_bytes() -> int:
    """Physical VMEM per core (generation-aware); conservative fallback = v7x."""
    try:
        return int(pltpu.get_tpu_info().vmem_capacity_bytes)
    except Exception:
        return 64 * 1024 * 1024


@functools.lru_cache(maxsize=None)
def _pick_f32_precision():
    """MXU precision for the f32 path.

    Precision.HIGHEST forces the multi-pass f32 MXU decomposition on every
    matmul (the biggest MXU-cycle lever per the perf review).  Use
    Precision.HIGH (bf16_3x) when the Pallas TPU lowering supports it AND it is
    numerically close to HIGHEST (guards against versions that would silently
    degrade it to a single bf16 pass); otherwise fall back to HIGHEST.
    """
    def make(prec):
        def k(a_ref, b_ref, o_ref):
            o_ref[...] = jnp.dot(a_ref[...], b_ref[...],
                                 preferred_element_type=jnp.float32,
                                 precision=prec)
        return pl.pallas_call(
            k, out_shape=jax.ShapeDtypeStruct((8, 128), jnp.float32))

    try:
        a = jnp.abs(jax.random.normal(jax.random.PRNGKey(1), (8, 128),
                                      jnp.float32)) + 0.1
        b = jnp.abs(jax.random.normal(jax.random.PRNGKey(2), (128, 128),
                                      jnp.float32))
        hi = make(lax.Precision.HIGH)(a, b)
        ref = make(lax.Precision.HIGHEST)(a, b)
        rel = float(jnp.max(jnp.abs(hi - ref) / jnp.abs(ref)))
        if rel < 5e-4:
            return lax.Precision.HIGH
    except Exception:
        pass
    return lax.Precision.HIGHEST


def _bilinear_matrix_np(out_size: int, in_size: int, pad_out: int | None = None):
    """M (pad_out, in_size) such that y = M @ x reproduces 1-D bilinear resize
    with align_corners=False (half-pixel centers, clamped). Rows >= out_size
    are zero padding (cropped in the wrapper). Built on host with numpy."""
    pad_out = out_size if pad_out is None else pad_out
    scale = in_size / out_size
    dst = np.arange(out_size, dtype=np.float64)
    src = np.clip((dst + 0.5) * scale - 0.5, 0.0, float(in_size - 1))
    i0 = np.floor(src).astype(np.int64)
    i1 = np.minimum(i0 + 1, in_size - 1)
    frac = src - i0
    m = np.zeros((pad_out, in_size), dtype=np.float64)
    rows = np.arange(out_size)
    np.add.at(m, (rows, i0), 1.0 - frac)
    np.add.at(m, (rows, i1), frac)
    return m.astype(np.float32)


def _pick_h_tile(h_out, fixed_bytes, per_row_bytes, vmem_cap, max_tile):
    """Output-row tile TH (multiple of 8) and padded height Hp = n*TH, sized so
    the per-step VMEM estimate stays inside ~60% of physical VMEM."""
    budget = int(0.6 * vmem_cap) - fixed_bytes
    if budget > 0 and per_row_bytes > 0:
        th_cap = max(8, (budget // per_row_bytes) // 8 * 8)
    else:
        # TODO(synk): width pass alone over budget -> needs contraction tiling.
        th_cap = 8
    max_tile = max(8, min(max_tile, th_cap))
    n = max(1, -(-h_out // max_tile))
    th = _round_up(-(-h_out // n), 8)
    return th, th * n


def _resize_kernel(x_ref, wwt_ref, wh_ref, o_ref, t_ref, *, c, compute_dtype,
                   precision):
    """One (batch, h-tile) grid step.

    x_ref  : (1, C, H_in, W_in)  whole image, resident across h-tiles
    wwt_ref: (W_in, Wp)          width interp matrix (pre-transposed, compute dtype)
    wh_ref : (TH, H_in)          this h-tile's rows of the height interp matrix
    o_ref  : (1, C, TH, Wp)      NCHW output block (Wp % 128 == 0 -> lane-dense)
    t_ref  : (C, H_in, Wp) f32   width-pass result, computed once per image
    """
    # Width pass: hoisted -- runs only on the first h-tile of each image.
    @pl.when(pl.program_id(1) == 0)
    def _width_pass():
        wwt = wwt_ref[...]
        for k in range(c):                                   # static unroll
            xk = x_ref[0, k].astype(compute_dtype)           # (H_in, W_in)
            t_ref[k] = jnp.dot(xk, wwt,
                               preferred_element_type=jnp.float32,
                               precision=precision)          # (H_in, Wp) f32

    # Height pass: per-channel matmul straight into that channel's output slice
    # (no concat regroup, no cross-channel VMEM copies).
    wh = wh_ref[...]
    for k in range(c):
        tk = t_ref[k].astype(compute_dtype)                  # (H_in, Wp)
        yk = jnp.dot(wh, tk, preferred_element_type=jnp.float32,
                     precision=precision)                    # (TH, Wp) f32
        o_ref[0, k] = yk.astype(o_ref.dtype)


@functools.partial(
    jax.jit,
    static_argnames=("c", "h_out", "w_out", "th", "out_dtype", "compute_dtype",
                     "precision", "vmem_limit"))
def _resize_group(x, wh, wwt, *, c, h_out, w_out, th, out_dtype, compute_dtype,
                  precision, vmem_limit):
    """x: (B, C, H_in, W_in); wh: (Hp, H_in); wwt: (W_in, Wp) -> (B, C, h_out, w_out)."""
    b, _, h_in, w_in = x.shape
    hp = wh.shape[0]
    wp = wwt.shape[1]
    n_h = hp // th

    out = pl.pallas_call(
        functools.partial(_resize_kernel, c=c, compute_dtype=compute_dtype,
                          precision=precision),
        out_shape=jax.ShapeDtypeStruct((b, c, hp, wp), out_dtype),
        grid=(b, n_h),
        in_specs=[
            # Whole image; block index changes only with the batch axis, so it
            # stays VMEM-resident across the inner h-tile loop.
            pl.BlockSpec((1, c, h_in, w_in), lambda bi, hi: (bi, 0, 0, 0)),
            # Grid-invariant width matrix.
            pl.BlockSpec((w_in, wp), lambda bi, hi: (0, 0)),
            # Per-h-tile rows of the height matrix.
            pl.BlockSpec((th, h_in), lambda bi, hi: (hi, 0)),
        ],
        # Direct NCHW output -> no post-call reshape/transpose HBM round-trip.
        out_specs=pl.BlockSpec((1, c, th, wp), lambda bi, hi: (bi, 0, hi, 0)),
        scratch_shapes=[pltpu.VMEM((c, h_in, wp), jnp.float32)],
        compiler_params=pltpu.CompilerParams(
            # batch "parallel" (megacore); h must be "arbitrary" because the
            # width-pass scratch is reused across h-tiles of one image.
            dimension_semantics=("parallel", "arbitrary"),
            vmem_limit_bytes=vmem_limit,
        ),
    )(x, wwt, wh)

    if hp != h_out or wp != w_out:            # crop padding only when present
        out = out[:, :, :h_out, :w_out]
    return out


class ResizePostProcessor:
    """JAX/Pallas port of kornia ResizePostProcessor (bilinear only)."""

    def __init__(self, interpolation_mode: str = "bilinear",
                 use_bf16_matmul: bool = False) -> None:
        if interpolation_mode != "bilinear":
            # TODO(synk): only bilinear interpolation is implemented in the kernel.
            raise NotImplementedError("only 'bilinear' is supported")
        self.interpolation_mode = interpolation_mode
        # bf16 operands / f32 accumulate: fastest MXU path (~1e-2 rel error on
        # float inputs), so it is opt-in; fine for uint8-style imagery.
        self.compute_dtype = jnp.bfloat16 if use_bf16_matmul else jnp.float32

    def __call__(self, imgs, original_sizes):
        # Output shapes must be static per kernel, so sizes are read on host
        # (mirrors PyTorch's .cpu().numpy().tolist()); this is the one sync.
        sizes = np.asarray(jax.device_get(original_sizes)).astype(np.int64).reshape(-1, 2)
        iters = len(imgs) if isinstance(imgs, list) else imgs.shape[0]

        # Group images sharing (shape, dtype, target size) into one pallas_call.
        groups: dict = {}
        for i in range(iters):
            img = imgs[i]
            key = (tuple(int(s) for s in img.shape), str(np.dtype(img.dtype)),
                   int(sizes[i][0]), int(sizes[i][1]))
            groups.setdefault(key, []).append(i)

        vmem_cap = _vmem_capacity_bytes()
        compute_dtype = self.compute_dtype
        cd_b = np.dtype(compute_dtype).itemsize
        precision = (_pick_f32_precision() if compute_dtype == jnp.float32 else None)

        results = [None] * iters
        for (shape, _dt, h_out, w_out), idxs in groups.items():
            c, h_in, w_in = shape
            batch = jnp.stack([jnp.asarray(imgs[i]) for i in idxs], axis=0)  # (B,C,H,W)
            if np.dtype(batch.dtype) not in (np.dtype(np.float32),
                                             np.dtype(jnp.bfloat16)):
                # TODO(synk): torch F.interpolate rejects integer dtypes; we
                #             promote to float32 instead (documented divergence).
                batch = batch.astype(jnp.float32)
            out_dtype = np.dtype(batch.dtype)

            wp = _round_up(w_out, 128)               # lane-dense output stores
            in_b = np.dtype(batch.dtype).itemsize
            out_b = out_dtype.itemsize
            # Rough per-step VMEM bytes (generation-aware budget).
            fixed = (2 * c * h_in * w_in * in_b      # image block (double-buffered)
                     + 2 * w_in * wp * cd_b          # wwt block
                     + c * h_in * wp * 4             # width-pass scratch
                     + h_in * wp * 4)                # width-pass dot intermediate
            per_row = (2 * c * wp * out_b            # output block (double-buffered)
                       + wp * 4                      # height-pass dot intermediate
                       + 2 * h_in * cd_b)            # wh block (double-buffered)
            max_tile = 256 if vmem_cap >= (96 << 20) else 128   # smaller TH on v7x
            th, hp = _pick_h_tile(h_out, fixed, per_row, vmem_cap, max_tile)
            vmem_limit = int(min(max(2 * (fixed + th * per_row), 32 << 20),
                                 int(0.75 * vmem_cap)))

            # Interpolation matrices, built host-side directly in compute dtype
            # (no per-grid-step in-kernel casts, halved DMA bytes on bf16 path).
            wh = jnp.asarray(_bilinear_matrix_np(h_out, h_in, pad_out=hp),
                             dtype=compute_dtype)                        # (Hp, H_in)
            wwt = jnp.asarray(np.ascontiguousarray(
                _bilinear_matrix_np(w_out, w_in, pad_out=wp).T),
                dtype=compute_dtype)                                     # (W_in, Wp)

            out = _resize_group(batch, wh, wwt, c=c, h_out=h_out, w_out=w_out,
                                th=th, out_dtype=out_dtype,
                                compute_dtype=compute_dtype, precision=precision,
                                vmem_limit=vmem_limit)
            for j, i in enumerate(idxs):
                results[i] = out[j][None]   # (1, C, H_out, W_out), like resize(img[None], ...)
        return results


if __name__ == "__main__":
    key = jax.random.PRNGKey(0)
    B, C, H, W = 2, 4, 16, 16
    imgs = jax.random.normal(key, (B, C, H, W), dtype=jnp.float32)
    # per-image original (height, width): one upscale, one identity
    original_sizes = jnp.array([[24, 32], [16, 16]], dtype=jnp.int32)

    post = ResizePostProcessor("bilinear")
    outs = post(imgs, original_sizes)
    outs = [jax.block_until_ready(o) for o in outs]

    # shape checks
    assert outs[0].shape == (1, C, 24, 32), outs[0].shape
    assert outs[1].shape == (1, C, 16, 16), outs[1].shape

    # identity-size resize reproduces the input (to bf16_3x MXU accuracy)
    np.testing.assert_allclose(np.asarray(outs[1][0]), np.asarray(imgs[1]),
                               rtol=1e-4, atol=1e-4)

    # cross-check the upscale against jax.image.resize (same half-pixel
    # bilinear convention; upsampling so antialias is a no-op)
    expected = jax.image.resize(imgs[0], (C, 24, 32), method="bilinear")
    np.testing.assert_allclose(np.asarray(outs[0][0]), np.asarray(expected),
                               rtol=1e-3, atol=5e-4)

    print("KERNEL_OK")
</pallas_src>

<mosaic_0001>
module attributes {stable_mosaic.version = 11 : i64} {
  func.func @_resize_kernel(%arg0: i32, %arg1: i32, %arg2: memref<1x4x16x16xf32, #tpu.memory_space<vmem>>, %arg3: memref<16x128xf32, #tpu.memory_space<vmem>>, %arg4: memref<24x16xf32, #tpu.memory_space<vmem>>, %arg5: memref<1x4x24x128xf32, #tpu.memory_space<vmem>>, %arg6: memref<4x16x128xf32, #tpu.memory_space<vmem>>) attributes {dimension_semantics = [#tpu.dimension_semantics<parallel>, #tpu.dimension_semantics<arbitrary>], iteration_bounds = array<i64: 1, 1>, scalar_prefetch = 0 : i64, scratch_operands = 1 : i64, tpu.core_type = #tpu.core_type<tc>, window_params = [{transform_indices = @transform_0, window_bounds = array<i64: 1, 4, 16, 16>}, {pipeline_mode = #tpu.pipeline_mode<synchronous>, transform_indices = @transform_1, window_bounds = array<i64: 16, 128>}, {transform_indices = @transform_2, window_bounds = array<i64: 24, 16>}, {transform_indices = @transform_3, window_bounds = array<i64: 1, 4, 24, 128>}]} {
    %c0_i32 = arith.constant 0 : i32
    %0 = arith.cmpi eq, %arg1, %c0_i32 : i32
    %1 = arith.extui %0 : i1 to i32
    %c0_i32_0 = arith.constant 0 : i32
    %2 = arith.cmpi ne, %1, %c0_i32_0 : i32
    scf.if %2 {
      %c0_30 = arith.constant 0 : index
      %c0_31 = arith.constant 0 : index
      %28 = vector.load %arg3[%c0_30, %c0_31] : memref<16x128xf32, #tpu.memory_space<vmem>>, vector<16x128xf32>
      %c0_32 = arith.constant 0 : index
      %c0_33 = arith.constant 0 : index
      %c0_34 = arith.constant 0 : index
      %c0_35 = arith.constant 0 : index
      %29 = vector.load %arg2[%c0_32, %c0_33, %c0_34, %c0_35] : memref<1x4x16x16xf32, #tpu.memory_space<vmem>>, vector<1x1x16x16xf32>
      %30 = vector.shape_cast %29 : vector<1x1x16x16xf32> to vector<16x16xf32>
      %cst_36 = arith.constant dense<0.000000e+00> : vector<16x128xf32>
      %31 = tpu.matmul %30, %28, %cst_36 {dimension_numbers = #tpu.dot_dimension_numbers<[1], [0], [0], [1], [0, 0, 1, 1], [], []>, precision = #tpu.contract_precision<fp32>} : vector<16x16xf32>, vector<16x128xf32>, vector<16x128xf32> -> vector<16x128xf32>
      %c0_37 = arith.constant 0 : index
      %c0_38 = arith.constant 0 : index
      %c0_39 = arith.constant 0 : index
      %32 = vector.load %arg6[%c0_37, %c0_38, %c0_39] : memref<4x16x128xf32, #tpu.memory_space<vmem>>, vector<1x16x128xf32>
      %33 = vector.shape_cast %32 : vector<1x16x128xf32> to vector<16x128xf32>
      %34 = vector.shape_cast %31 : vector<16x128xf32> to vector<1x16x128xf32>
      tpu.vector_store %arg6[%c0_37, %c0_38, %c0_39], %34 {strides = array<i32>} : memref<4x16x128xf32, #tpu.memory_space<vmem>>, vector<1x16x128xf32>,
      %c0_40 = arith.constant 0 : index
      %c1_41 = arith.constant 1 : index
      %c0_42 = arith.constant 0 : index
      %c0_43 = arith.constant 0 : index
      %35 = vector.load %arg2[%c0_40, %c1_41, %c0_42, %c0_43] : memref<1x4x16x16xf32, #tpu.memory_space<vmem>>, vector<1x1x16x16xf32>
      %36 = vector.shape_cast %35 : vector<1x1x16x16xf32> to vector<16x16xf32>
      %cst_44 = arith.constant dense<0.000000e+00> : vector<16x128xf32>
      %37 = tpu.matmul %36, %28, %cst_44 {dimension_numbers = #tpu.dot_dimension_numbers<[1], [0], [0], [1], [0, 0, 1, 1], [], []>, precision = #tpu.contract_precision<fp32>} : vector<16x16xf32>, vector<16x128xf32>, vector<16x128xf32> -> vector<16x128xf32>
      %c1_45 = arith.constant 1 : index
      %c0_46 = arith.constant 0 : index
      %c0_47 = arith.constant 0 : index
      %38 = vector.load %arg6[%c1_45, %c0_46, %c0_47] : memref<4x16x128xf32, #tpu.memory_space<vmem>>, vector<1x16x128xf32>
      %39 = vector.shape_cast %38 : vector<1x16x128xf32> to vector<16x128xf32>
      %40 = vector.shape_cast %37 : vector<16x128xf32> to vector<1x16x128xf32>
      tpu.vector_store %arg6[%c1_45, %c0_46, %c0_47], %40 {strides = array<i32>} : memref<4x16x128xf32, #tpu.memory_space<vmem>>, vector<1x16x128xf32>,
      %c0_48 = arith.constant 0 : index
      %c2_49 = arith.constant 2 : index
      %c0_50 = arith.constant 0 : index
      %c0_51 = arith.constant 0 : index
      %41 = vector.load %arg2[%c0_48, %c2_49, %c0_50, %c0_51] : memref<1x4x16x16xf32, #tpu.memory_space<vmem>>, vector<1x1x16x16xf32>
      %42 = vector.shape_cast %41 : vector<1x1x16x16xf32> to vector<16x16xf32>
      %cst_52 = arith.constant dense<0.000000e+00> : vector<16x128xf32>
      %43 = tpu.matmul %42, %28, %cst_52 {dimension_numbers = #tpu.dot_dimension_numbers<[1], [0], [0], [1], [0, 0, 1, 1], [], []>, precision = #tpu.contract_precision<fp32>} : vector<16x16xf32>, vector<16x128xf32>, vector<16x128xf32> -> vector<16x128xf32>
      %c2_53 = arith.constant 2 : index
      %c0_54 = arith.constant 0 : index
      %c0_55 = arith.constant 0 : index
      %44 = vector.load %arg6[%c2_53, %c0_54, %c0_55] : memref<4x16x128xf32, #tpu.memory_space<vmem>>, vector<1x16x128xf32>
      %45 = vector.shape_cast %44 : vector<1x16x128xf32> to vector<16x128xf32>
      %46 = vector.shape_cast %43 : vector<16x128xf32> to vector<1x16x128xf32>
      tpu.vector_store %arg6[%c2_53, %c0_54, %c0_55], %46 {strides = array<i32>} : memref<4x16x128xf32, #tpu.memory_space<vmem>>, vector<1x16x128xf32>,
      %c0_56 = arith.constant 0 : index
      %c3_57 = arith.constant 3 : index
      %c0_58 = arith.constant 0 : index
      %c0_59 = arith.constant 0 : index
      %47 = vector.load %arg2[%c0_56, %c3_57, %c0_58, %c0_59] : memref<1x4x16x16xf32, #tpu.memory_space<vmem>>, vector<1x1x16x16xf32>
      %48 = vector.shape_cast %47 : vector<1x1x16x16xf32> to vector<16x16xf32>
      %cst_60 = arith.constant dense<0.000000e+00> : vector<16x128xf32>
      %49 = tpu.matmul %48, %28, %cst_60 {dimension_numbers = #tpu.dot_dimension_numbers<[1], [0], [0], [1], [0, 0, 1, 1], [], []>, precision = #tpu.contract_precision<fp32>} : vector<16x16xf32>, vector<16x128xf32>, vector<16x128xf32> -> vector<16x128xf32>
      %c3_61 = arith.constant 3 : index
      %c0_62 = arith.constant 0 : index
      %c0_63 = arith.constant 0 : index
      %50 = vector.load %arg6[%c3_61, %c0_62, %c0_63] : memref<4x16x128xf32, #tpu.memory_space<vmem>>, vector<1x16x128xf32>
      %51 = vector.shape_cast %50 : vector<1x16x128xf32> to vector<16x128xf32>
      %52 = vector.shape_cast %49 : vector<16x128xf32> to vector<1x16x128xf32>
      tpu.vector_store %arg6[%c3_61, %c0_62, %c0_63], %52 {strides = array<i32>} : memref<4x16x128xf32, #tpu.memory_space<vmem>>, vector<1x16x128xf32>,
    } else {
    }
    %c0 = arith.constant 0 : index
    %c0_1 = arith.constant 0 : index
    %3 = vector.load %arg4[%c0, %c0_1] : memref<24x16xf32, #tpu.memory_space<vmem>>, vector<24x16xf32>
    %c0_2 = arith.constant 0 : index
    %c0_3 = arith.constant 0 : index
    %c0_4 = arith.constant 0 : index
    %4 = vector.load %arg6[%c0_2, %c0_3, %c0_4] : memref<4x16x128xf32, #tpu.memory_space<vmem>>, vector<1x16x128xf32>
    %5 = vector.shape_cast %4 : vector<1x16x128xf32> to vector<16x128xf32>
    %cst = arith.constant dense<0.000000e+00> : vector<24x128xf32>
    %6 = tpu.matmul %3, %5, %cst {dimension_numbers = #tpu.dot_dimension_numbers<[1], [0], [0], [1], [0, 0, 1, 1], [], []>, precision = #tpu.contract_precision<fp32>} : vector<24x16xf32>, vector<16x128xf32>, vector<24x128xf32> -> vector<24x128xf32>
    %c0_5 = arith.constant 0 : index
    %c0_6 = arith.constant 0 : index
    %c0_7 = arith.constant 0 : index
    %c0_8 = arith.constant 0 : index
    %7 = vector.load %arg5[%c0_5, %c0_6, %c0_7, %c0_8] : memref<1x4x24x128xf32, #tpu.memory_space<vmem>>, vector<1x1x24x128xf32>
    %8 = vector.shape_cast %7 : vector<1x1x24x128xf32> to vector<24x128xf32>
    %9 = vector.shape_cast %6 : vector<24x128xf32> to vector<1x1x24x128xf32>
    tpu.vector_store %arg5[%c0_5, %c0_6, %c0_7, %c0_8], %9 {strides = array<i32>} : memref<1x4x24x128xf32, #tpu.memory_space<vmem>>, vector<1x1x24x128xf32>,
    %c1 = arith.constant 1 : index
    %c0_9 = arith.constant 0 : index
    %c0_10 = arith.constant 0 : index
    %10 = vector.load %arg6[%c1, %c0_9, %c0_10] : memref<4x16x128xf32, #tpu.memory_space<vmem>>, vector<1x16x128xf32>
    %11 = vector.shape_cast %10 : vector<1x16x128xf32> to vector<16x128xf32>
    %cst_11 = arith.constant dense<0.000000e+00> : vector<24x128xf32>
    %12 = tpu.matmul %3, %11, %cst_11 {dimension_numbers = #tpu.dot_dimension_numbers<[1], [0], [0], [1], [0, 0, 1, 1], [], []>, precision = #tpu.contract_precision<fp32>} : vector<24x16xf32>, vector<16x128xf32>, vector<24x128xf32> -> vector<24x128xf32>
    %c0_12 = arith.constant 0 : index
    %c1_13 = arith.constant 1 : index
    %c0_14 = arith.constant 0 : index
    %c0_15 = arith.constant 0 : index
    %13 = vector.load %arg5[%c0_12, %c1_13, %c0_14, %c0_15] : memref<1x4x24x128xf32, #tpu.memory_space<vmem>>, vector<1x1x24x128xf32>
    %14 = vector.shape_cast %13 : vector<1x1x24x128xf32> to vector<24x128xf32>
    %15 = vector.shape_cast %12 : vector<24x128xf32> to vector<1x1x24x128xf32>
    tpu.vector_store %arg5[%c0_12, %c1_13, %c0_14, %c0_15], %15 {strides = array<i32>} : memref<1x4x24x128xf32, #tpu.memory_space<vmem>>, vector<1x1x24x128xf32>,
    %c2 = arith.constant 2 : index
    %c0_16 = arith.constant 0 : index
    %c0_17 = arith.constant 0 : index
    %16 = vector.load %arg6[%c2, %c0_16, %c0_17] : memref<4x16x128xf32, #tpu.memory_space<vmem>>, vector<1x16x128xf32>
    %17 = vector.shape_cast %16 : vector<1x16x128xf32> to vector<16x128xf32>
    %cst_18 = arith.constant dense<0.000000e+00> : vector<24x128xf32>
    %18 = tpu.matmul %3, %17, %cst_18 {dimension_numbers = #tpu.dot_dimension_numbers<[1], [0], [0], [1], [0, 0, 1, 1], [], []>, precision = #tpu.contract_precision<fp32>} : vector<24x16xf32>, vector<16x128xf32>, vector<24x128xf32> -> vector<24x128xf32>
    %c0_19 = arith.constant 0 : index
    %c2_20 = arith.constant 2 : index
    %c0_21 = arith.constant 0 : index
    %c0_22 = arith.constant 0 : index
    %19 = vector.load %arg5[%c0_19, %c2_20, %c0_21, %c0_22] : memref<1x4x24x128xf32, #tpu.memory_space<vmem>>, vector<1x1x24x128xf32>
    %20 = vector.shape_cast %19 : vector<1x1x24x128xf32> to vector<24x128xf32>
    %21 = vector.shape_cast %18 : vector<24x128xf32> to vector<1x1x24x128xf32>
    tpu.vector_store %arg5[%c0_19, %c2_20, %c0_21, %c0_22], %21 {strides = array<i32>} : memref<1x4x24x128xf32, #tpu.memory_space<vmem>>, vector<1x1x24x128xf32>,
    %c3 = arith.constant 3 : index
    %c0_23 = arith.constant 0 : index
    %c0_24 = arith.constant 0 : index
    %22 = vector.load %arg6[%c3, %c0_23, %c0_24] : memref<4x16x128xf32, #tpu.memory_space<vmem>>, vector<1x16x128xf32>
    %23 = vector.shape_cast %22 : vector<1x16x128xf32> to vector<16x128xf32>
    %cst_25 = arith.constant dense<0.000000e+00> : vector<24x128xf32>
    %24 = tpu.matmul %3, %23, %cst_25 {dimension_numbers = #tpu.dot_dimension_numbers<[1], [0], [0], [1], [0, 0, 1, 1], [], []>, precision = #tpu.contract_precision<fp32>} : vector<24x16xf32>, vector<16x128xf32>, vector<24x128xf32> -> vector<24x128xf32>
    %c0_26 = arith.constant 0 : index
    %c3_27 = arith.constant 3 : index
    %c0_28 = arith.constant 0 : index
    %c0_29 = arith.constant 0 : index
    %25 = vector.load %arg5[%c0_26, %c3_27, %c0_28, %c0_29] : memref<1x4x24x128xf32, #tpu.memory_space<vmem>>, vector<1x1x24x128xf32>
    %26 = vector.shape_cast %25 : vector<1x1x24x128xf32> to vector<24x128xf32>
    %27 = vector.shape_cast %24 : vector<24x128xf32> to vector<1x1x24x128xf32>
    tpu.vector_store %arg5[%c0_26, %c3_27, %c0_28, %c0_29], %27 {strides = array<i32>} : memref<1x4x24x128xf32, #tpu.memory_space<vmem>>, vector<1x1x24x128xf32>,
    return
  }
  func.func @transform_0(%arg0: i32, %arg1: i32) -> (i32, i32, i32, i32) {
    %c0_i32 = arith.constant 0 : i32
    %c0_i32_0 = arith.constant 0 : i32
    %c0_i32_1 = arith.constant 0 : i32
    %c0_i32_2 = arith.constant 0 : i32
    return %arg0, %c0_i32, %c0_i32_0, %c0_i32_1 : i32, i32, i32, i32
  }
  func.func @transform_1(%arg0: i32, %arg1: i32) -> (i32, i32) {
    %c0_i32 = arith.constant 0 : i32
    %c0_i32_0 = arith.constant 0 : i32
    %c0_i32_1 = arith.constant 0 : i32
    return %c0_i32, %c0_i32_0 : i32, i32
  }
  func.func @transform_2(%arg0: i32, %arg1: i32) -> (i32, i32) {
    %c0_i32 = arith.constant 0 : i32
    %c0_i32_0 = arith.constant 0 : i32
    return %arg1, %c0_i32 : i32, i32
  }
  func.func @transform_3(%arg0: i32, %arg1: i32) -> (i32, i32, i32, i32) {
    %c0_i32 = arith.constant 0 : i32
    %c0_i32_0 = arith.constant 0 : i32
    %c0_i32_1 = arith.constant 0 : i32
    return %arg0, %c0_i32, %arg1, %c0_i32_0 : i32, i32, i32, i32
  }
}

</mosaic_0001>

<bundles_post_ra>
// kernel: _resize_group.1
= control target key start
LH: loop header
LB: loop body
LE: loop exit
PB: predicated region body
PF: predicated region fallthrough
CT: control target
= control target key end

     0   :  { %8 = vsyncpa [#allocation4], 0  ;;  %s2101_s0 = inlined_call_operand.hbm [shape: f32[1,4,16,16], index: 0, kind: input, shape index: {}]   ;;  %s2102_s1 = inlined_call_operand.vmem [shape: f32[16,128], index: 1, kind: input, shape index: {}]   ;;  %s2103_s2 = inlined_call_operand.vmem [shape: f32[24,16], index: 2, kind: input, shape index: {}]   ;;  %s2104_s3 = inlined_call_operand.hbm [shape: f32[1,4,24,128], index: 3, kind: output, shape index: {}]  }
   0x1   :  { %9 = vsyncpa [#allocation5], 0  ;;  %s14_s14 = sshll.u32 %s2101_s0, 4  ;;  %s1842_s15 = smov [#allocation3]   ;;  %s15_s14 = int_to_ptr.hbm [resolvable:$true] %s14_s14 }
   0x2   :  { %s16_s16 = sshll.u32 %s1842_s15, 4  ;;  %s1843_s17 = smov 128   ;;  %s17_s16 = int_to_ptr.vmem [resolvable:$true] %s16_s16 }
   0x3   :  { %s1844_s18 = smov 8  }
   0x4   :  { %22 = dma.hbm_to_vmem [thread:$0]  %s15_s14, 1024, %s17_s16, [#allocation4], %s1843_s17, %s1843_s17, %s1844_s18  }
   0x5   :  { %1838 = dma.done.wait [#allocation4], 1024  }
   0x6   :  { %1839 = vsyncadd [#allocation4], 4294966272  ;;  %vm39_vm0 = vcmask 130048   ;;  %v36_v0 = vld [vmem:[%s2102_s1 + $0x8] sm:$0xff]  ;;  %v35_v1 = vld [vmem:[%s2102_s1] sm:$0xff]  ;;  %s1773_s30 = sshll.u32 %s2104_s3, 4  ;;  %s1774_s30 = int_to_ptr.hbm [resolvable:$true] %s1773_s30 }
   0x7   :  { %v37_v2 = vld [vmem:[#allocation3] sm:$0xff]  ;;  %v1878_v3 = vand.u32 4294901760, %v36_v0  ;;  %v1880_v4 = vand.u32 4294901760, %v35_v1  ;;  %v38_v6 = vld [vmem:[#allocation3 + $0x8] sm:$0xff]  ;;  %v239_v7 = vld [vmem:[#allocation3 + $0x10] sm:$0xff] }
   0x8   :  { %v41_v5 = vsel %vm39_vm0, %v37_v2, 0  ;;  %v44_v9 = vsel %vm39_vm0, %v38_v6, 0  ;;  %v242_v10 = vsel %vm39_vm0, %v239_v7, 0  ;;  %v240_v20 = vld [vmem:[#allocation3 + $0x18] sm:$0xff]  ;;  %v441_v40 = vld [vmem:[#allocation3 + $0x20] sm:$0xff]  ;;  %v442_v43 = vld [vmem:[#allocation3 + $0x28] sm:$0xff] }
   0x9   :  { %v1883_v8 = vand.u32 4294901760, %v41_v5  ;;  %v1888_v11 = vsub.f32 %v36_v0, %v1878_v3  ;;  %162 = vmatpush.msra.mxu3 %v1878_v3  ;;  %61 = vmatpush.msra.mxu0 %v1878_v3  ;;  %v1893_v12 = vsub.f32 %v35_v1, %v1880_v4  ;;  %v1895_v13 = vand.u32 4294901760, %v44_v9  ;;  %v643_v46 = vld [vmem:[#allocation3 + $0x30] sm:$0xff]  ;;  %v644_v53 = vld [vmem:[#allocation3 + $0x38] sm:$0xff] }
   0xa   :  { %v1898_v15 = vand.u32 4294901760, %v242_v10  ;;  %v245_v28 = vsel %vm39_vm0, %v240_v20, 0  ;;  %v444_v41 = vsel %vm39_vm0, %v441_v40, 0  ;;  %v447_v45 = vsel %vm39_vm0, %v442_v43, 0  ;;  %v845_v20 = vld [vmem:[%s2103_s2 + $0x8] sm:$0xff] }
   0xb   :  { %v65_v14 = vsub.f32 %v41_v5, %v1883_v8  ;;  %132 = vmatpush.msra.mxu2 %v1888_v11  ;;  %164 = vmatpush.msra.mxu3 %v1880_v4  ;;  %v1903_v16 = vand.u32 4294901760, %v1888_v11  ;;  %v1906_v17 = vand.u32 4294901760, %v1893_v12  ;;  %v73_v18 = vsub.f32 %v44_v9, %v1895_v13 }
   0xc   :  { %63 = vmatpush.msra.mxu0 %v1880_v4  ;;  %v1917_v25 = vsub.f32 %v242_v10, %v1898_v15  ;;  %v273_v32 = vand.u32 4294901760, %v245_v28  ;;  %v467_v42 = vand.u32 4294901760, %v444_v41  ;;  %v475_v48 = vand.u32 4294901760, %v447_v45  ;;  %v844_v10 = vld [vmem:[%s2103_s2] sm:$0xff] }
   0xd   :  { %v66_v19 = vand.u32 4294901760, %v65_v14  ;;  %135 = vmatpush.msra.mxu2 %v1893_v12  ;;  %v98_v21 = vsub.f32 %v1888_v11, %v1903_v16  ;;  %v104_v22 = vsub.f32 %v1893_v12, %v1906_v17  ;;  %v74_v24 = vand.u32 4294901760, %v73_v18 }
   0xe   :  { %195 = vmatpush.msrb.mxu0 %v1903_v16  ;;  %138 = vmatmul.f32.vlgmr.msra.gmra.mxu2 %v65_v14  ;;  %v267_v31 = vand.u32 4294901760, %v1917_v25  ;;  %v274_v35 = vsub.f32 %v245_v28, %v273_v32  ;;  %v468_v44 = vsub.f32 %v444_v41, %v467_v42  ;;  %v646_v49 = vsel %vm39_vm0, %v643_v46, 0 }
   0xf   :  { %168 = vmatmul.f32.vlgmr.msra.gmra.mxu3 %v66_v19  ;;  %v67_v23 = vsub.f32 %v65_v14, %v66_v19  ;;  %v99_v26 = vand.u32 4294901760, %v98_v21  ;;  %v105_v27 = vand.u32 4294901760, %v104_v22  ;;  %262 = vmatpush.msrb.mxu2 %v1878_v3  ;;  %v75_v30 = vsub.f32 %v73_v18, %v74_v24 }
  0x10   :  { %199 = vmatpush.msrb.mxu0 %v1906_v17  ;;  %v268_v34 = vsub.f32 %v1917_v25, %v267_v31  ;;  %v275_v37 = vand.u32 4294901760, %v274_v35  ;;  %v469_v47 = vand.u32 4294901760, %v468_v44  ;;  %v476_v51 = vsub.f32 %v447_v45, %v475_v48 }
  0x11   :  { %v68_v29 = vand.u32 4294901760, %v67_v23  ;;  %100 = vmatpush.msra.mxu1 %v99_v26  ;;  %301 = vmatpush.msrb.mxu3 %v99_v26  ;;  %v76_v33 = vand.u32 4294901760, %v75_v30  ;;  %v669_v52 = vand.u32 4294901760, %v646_v49  ;;  %v649_v57 = vsel %vm39_vm0, %v644_v53, 0 }
  0x12   :  { %264 = vmatpush.msrb.mxu2 %v1880_v4  ;;  %v269_v36 = vand.u32 4294901760, %v268_v34  ;;  %v276_v38 = vsub.f32 %v274_v35, %v275_v37  ;;  %v470_v50 = vsub.f32 %v468_v44, %v469_v47  ;;  %v477_v55 = vand.u32 4294901760, %v476_v51  ;;  %v846_v34 = vld [vmem:[%s2103_s2 + $0x10] sm:$0xff]  ;;  %s1845_s2 = smov [#allocation6]  }
  0x13   :  { %69 = vmatmul.f32.vlgmr.msra.gmra.mxu0 %v68_v29  ;;  %106 = vmatpush.msra.mxu1 %v105_v27  ;;  %v670_v56 = vsub.f32 %v646_v49, %v669_v52  ;;  %v677_v60 = vand.u32 4294901760, %v649_v57  ;;  %v854_v28 = vsel %vm39_vm0, %v845_v20, 0  ;;  %v857_v43 = vsel %vm39_vm0, %v846_v34, 0  ;;  %s1771_s27 = sshll.u32 %s1845_s2, 4  ;;  %s1772_s27 = int_to_ptr.vmem [resolvable:$true] %s1771_s27 }
  0x14   :  { %307 = vmatpush.msrb.mxu3 %v105_v27  ;;  %108 = vmatmul.f32.vlgmr.msra.gmra.mxu1 %v1883_v8  ;;  %v277_v39 = vand.u32 4294901760, %v276_v38  ;;  %v471_v54 = vand.u32 4294901760, %v470_v50  ;;  %v478_v58 = vsub.f32 %v476_v51, %v477_v55  ;;  %v1985_v30 = vand.u32 4294901760, %v854_v28 }
  0x15   :  { %396 = vmatpush.msra.mxu2 %v1903_v16  ;;  %224 = vmatpush.msrb.mxu1 %v1878_v3  ;;  %v671_v59 = vand.u32 4294901760, %v670_v56  ;;  %v678_v63 = vsub.f32 %v649_v57, %v677_v60 }
  0x16   :  { %333 = vmatpush.msra.mxu0 %v1888_v11  ;;  %143 = vmatmul.f32.gmra.mxu2 %v73_v18  ;;  %v479_v61 = vand.u32 4294901760, %v478_v58 }
  0x17   :  { %174 = vmatmul.f32.gmra.mxu3 %v74_v24  ;;  %226 = vmatpush.msrb.mxu1 %v1880_v4  ;;  %v672_v62 = vsub.f32 %v670_v56, %v671_v59  ;;  %v679_v1 = vand.u32 4294901760, %v678_v63 }
  0x18   :  { %400 = vmatpush.msra.mxu2 %v1906_v17  ;;  %425 = vmatpush.msra.mxu3 %v1878_v3 }
  0x19   :  { %336 = vmatpush.msra.mxu0 %v1893_v12  ;;  %363 = vmatpush.msra.mxu1 %v1878_v3  ;;  %v673_v0 = vand.u32 4294901760, %v672_v62  ;;  %v680_v2 = vsub.f32 %v678_v63, %v679_v1 }
  0x1a   :  { %427 = vmatpush.msra.mxu3 %v1880_v4 }
  0x1b   :  { %77 = vmatmul.f32.gmra.mxu0 %v76_v33  ;;  %365 = vmatpush.msra.mxu1 %v1880_v4  ;;  %v681_v5 = vand.u32 4294901760, %v680_v2 }
  0x1c   :  { %112 = vmatmul.f32.gmra.mxu1 %v1895_v13 }
  0x1e   :  { %270 = vmatmul.f32.vlgmr.msrb.gmra.mxu2 %v269_v36 }
  0x1f   :  { %309 = vmatmul.f32.vlgmr.msrb.gmra.mxu3 %v1898_v15  ;;  %535 = vmatpush.msrb.mxu2 %v1888_v11 }
  0x20   :  { %565 = vmatpush.msrb.mxu3 %v1878_v3 }
  0x21   :  { %538 = vmatpush.msrb.mxu2 %v1893_v12 }
  0x22   :  { %567 = vmatpush.msrb.mxu3 %v1880_v4 }
  0x23   :  { %201 = vmatmul.f32.vlgmr.msrb.gmra.mxu0 %v1883_v8 }
  0x24   :  { %464 = vmatpush.msrb.mxu0 %v1878_v3  ;;  %228 = vmatmul.f32.vlgmr.msrb.gmra.mxu1 %v1883_v8 }
  0x25   :  { %503 = vmatpush.msrb.mxu1 %v99_v26 }
  0x26   :  { %466 = vmatpush.msrb.mxu0 %v1880_v4  ;;  %278 = vmatmul.f32.gmra.mxu2 %v277_v39  ;;  %v1995_v39 = vsub.f32 %v854_v28, %v1985_v30 }
  0x27   :  { %313 = vmatmul.f32.gmra.mxu3 %v273_v32  ;;  %509 = vmatpush.msrb.mxu1 %v105_v27 }
  0x28   :  { %v2002_v46 = vand.u32 4294901760, %v1995_v39 }
  0x2b   :  { %205 = vmatmul.f32.gmra.mxu0 %v1895_v13 }
  0x2c   :  { %232 = vmatmul.f32.gmra.mxu1 %v1895_v13 }
  0x2e   :  { %402 = vmatmul.f32.vlgmr.msra.gmra.mxu2 %v1898_v15 }
  0x2f   :  { %429 = vmatmul.f32.vlgmr.msra.gmra.mxu3 %v1898_v15  ;;  %666 = vmatpush.msra.mxu2 %v1878_v3  ;;  %v851_v15 = vsel %vm39_vm0, %v844_v10, 0 }
  0x30   :  { %705 = vmatpush.msra.mxu3 %v99_v26 }
  0x31   :  { %668 = vmatpush.msra.mxu2 %v1880_v4 }
  0x32   :  { %711 = vmatpush.msra.mxu3 %v105_v27 }
  0x33   :  { %339 = vmatmul.f32.vlgmr.msra.gmra.mxu0 %v1917_v25 }
  0x34   :  { %598 = vmatpush.msra.mxu0 %v1903_v16  ;;  %369 = vmatmul.f32.vlgmr.msra.gmra.mxu1 %v267_v31 }
  0x35   :  { %627 = vmatpush.msra.mxu1 %v1878_v3 }
  0x36   :  { %602 = vmatpush.msra.mxu0 %v1906_v17  ;;  %406 = vmatmul.f32.gmra.mxu2 %v273_v32 }
  0x37   :  { %433 = vmatmul.f32.gmra.mxu3 %v273_v32  ;;  %629 = vmatpush.msra.mxu1 %v1880_v4 }
  0x3b   :  { %344 = vmatmul.f32.gmra.mxu0 %v274_v35 }
  0x3c   :  { %375 = vmatmul.f32.gmra.mxu1 %v275_v37 }
  0x3e   :  { %541 = vmatmul.f32.vlgmr.msrb.gmra.mxu2 %v468_v44 }
  0x3f   :  { %571 = vmatmul.f32.vlgmr.msrb.gmra.mxu3 %v469_v47  ;;  %800 = vmatpush.msrb.mxu2 %v1903_v16  ;;  %v1973_v16 = vand.u32 4294901760, %v851_v15  ;;  %v2004_v47 = vand.u32 4294901760, %v857_v43 }
  0x40   :  { %829 = vmatpush.msrb.mxu3 %v1878_v3 }
  0x41   :  { %804 = vmatpush.msrb.mxu2 %v1906_v17  ;;  %v1979_v24 = vsub.f32 %v851_v15, %v1973_v16  ;;  %v2012_v57 = vsub.f32 %v857_v43, %v2004_v47 }
  0x42   :  { %831 = vmatpush.msrb.mxu3 %v1880_v4 }
  0x43   :  { %472 = vmatmul.f32.vlgmr.msrb.gmra.mxu0 %v471_v54  ;;  %v1983_v29 = vand.u32 4294901760, %v1979_v24 }
  0x44   :  { %737 = vmatpush.msrb.mxu0 %v1888_v11  ;;  %511 = vmatmul.f32.vlgmr.msrb.gmra.mxu1 %v467_v42 }
  0x45   :  { %767 = vmatpush.msrb.mxu1 %v1878_v3  ;;  %v880_v38 = vsub.f32 %v1979_v24, %v1983_v29 }
  0x46   :  { %740 = vmatpush.msrb.mxu0 %v1893_v12  ;;  %546 = vmatmul.f32.gmra.mxu2 %v476_v51 }
  0x47   :  { %577 = vmatmul.f32.gmra.mxu3 %v477_v55  ;;  %769 = vmatpush.msrb.mxu1 %v1880_v4  ;;  %v1999_v45 = vand.u32 4294901760, %v880_v38 }
  0x4b   :  { %480 = vmatmul.f32.gmra.mxu0 %v479_v61 }
  0x4c   :  { %515 = vmatmul.f32.gmra.mxu1 %v475_v48 }
  0x4e   :  { %674 = vmatmul.f32.vlgmr.msra.gmra.mxu2 %v673_v0 }
  0x4f   :  { %713 = vmatmul.f32.vlgmr.msra.gmra.mxu3 %v669_v52 }
  0x53   :  { %604 = vmatmul.f32.vlgmr.msra.gmra.mxu0 %v467_v42 }
  0x54   :  { %631 = vmatmul.f32.vlgmr.msra.gmra.mxu1 %v467_v42 }
  0x56   :  { %682 = vmatmul.f32.gmra.mxu2 %v681_v5 }
  0x57   :  { %717 = vmatmul.f32.gmra.mxu3 %v677_v60 }
  0x5b   :  { %608 = vmatmul.f32.gmra.mxu0 %v475_v48 }
  0x5c   :  { %635 = vmatmul.f32.gmra.mxu1 %v475_v48 }
  0x5e   :  { %806 = vmatmul.f32.vlgmr.msrb.gmra.mxu2 %v669_v52 }
  0x5f   :  { %833 = vmatmul.f32.vlgmr.msrb.gmra.mxu3 %v669_v52 }
  0x63   :  { %743 = vmatmul.f32.vlgmr.msrb.gmra.mxu0 %v670_v56  ;;  %v888_v56 = vsub.f32 %v1995_v39, %v2002_v46 }
  0x64   :  { %773 = vmatmul.f32.vlgmr.msrb.gmra.mxu1 %v671_v59 }
  0x65   :  { %v2016_v0 = vand.u32 4294901760, %v888_v56 }
  0x66   :  { %810 = vmatmul.f32.gmra.mxu2 %v677_v60 }
  0x67   :  { %837 = vmatmul.f32.gmra.mxu3 %v677_v60 }
  0x6b   :  { %748 = vmatmul.f32.gmra.mxu0 %v678_v63 }
  0x6c   :  { %779 = vmatmul.f32.gmra.mxu1 %v679_v1  ;;  %v2019_v1 = vand.u32 4294901760, %v2012_v57 }
  0x90   :  { %v70_v3 = vpop.f32.mrf.mxu0 }
  0x91   :  { %v109_v4 = vpop.f32.mrf.mxu1  ;;  %v139_v6 = vpop.f32.mrf.mxu2 }
  0x92   :  { %v169_v7 = vpop.f32.mrf.mxu3  ;;  %v110_v8 = vadd.f32 %v109_v4, %v70_v3 }
  0x94   :  { %v140_v13 = vadd.f32 %v139_v6, %v110_v8 }
  0x96   :  { %v170_v17 = vadd.f32 %v169_v7, %v140_v13 }
  0x98   :  { %v78_v9 = vpop.f32.mrf.mxu0 }
  0x99   :  { %v113_v11 = vpop.f32.mrf.mxu1  ;;  %v144_v12 = vpop.f32.mrf.mxu2 }
  0x9a   :  { %v175_v14 = vpop.f32.mrf.mxu3  ;;  %v114_v18 = vadd.f32 %v113_v11, %v78_v9  ;;  %v896_v9 = vsub.f32 %v2012_v57, %v2019_v1 }
  0x9c   :  { %v145_v25 = vadd.f32 %v144_v12, %v114_v18 }
  0x9e   :  { %v176_v31 = vadd.f32 %v175_v14, %v145_v25  ;;  %v2028_v14 = vand.u32 4294901760, %v896_v9 }
  0xa0   :  { %v202_v19 = vpop.f32.mrf.mxu0 }
  0xa1   :  { %v203_v21 = vadd.f32 %v202_v19, %v170_v17  ;;  %v229_v22 = vpop.f32.mrf.mxu1  ;;  %v271_v23 = vpop.f32.mrf.mxu2 }
  0xa2   :  { %v310_v27 = vpop.f32.mrf.mxu3 }
  0xa3   :  { %v230_v26 = vadd.f32 %v229_v22, %v203_v21  ;;  %v311_v48 = vadd.f32 %v310_v27, %v271_v23 }
  0xa5   :  { %v1987_v32 = vand.u32 4294901760, %v230_v26 }
  0xa7   :  { %v923_v40 = vsub.f32 %v230_v26, %v1987_v32 }
  0xa8   :  { %v206_v33 = vpop.f32.mrf.mxu0 }
  0xa9   :  { %v207_v35 = vadd.f32 %v206_v33, %v176_v31  ;;  %v233_v36 = vpop.f32.mrf.mxu1  ;;  %v279_v37 = vpop.f32.mrf.mxu2  ;;  %v924_v50 = vand.u32 4294901760, %v923_v40 }
  0xaa   :  { %v314_v42 = vpop.f32.mrf.mxu3 }
  0xab   :  { %v234_v41 = vadd.f32 %v233_v36, %v207_v35  ;;  %v925_v61 = vsub.f32 %v923_v40, %v924_v50  ;;  %v315_v2 = vadd.f32 %v314_v42, %v279_v37 }
  0xad   :  { %v873_v44 = vand.u32 4294901760, %v234_v41  ;;  %v926_v3 = vand.u32 4294901760, %v925_v61 }
  0xaf   :  { %v917_v49 = vsub.f32 %v234_v41, %v873_v44  ;;  %874 = vmatpush.msra.mxu0 %v873_v44  ;;  %992 = vmatpush.msra.mxu3 %v873_v44 }
  0xb0   :  { %v340_v51 = vpop.f32.mrf.mxu0 }
  0xb1   :  { %v341_v52 = vadd.f32 %v340_v51, %v311_v48  ;;  %876 = vmatpush.msra.mxu0 %v1987_v32  ;;  %957 = vmatpush.msra.mxu2 %v917_v49  ;;  %v918_v53 = vand.u32 4294901760, %v917_v49  ;;  %v370_v54 = vpop.f32.mrf.mxu1  ;;  %v403_v55 = vpop.f32.mrf.mxu2 }
  0xb2   :  { %994 = vmatpush.msra.mxu3 %v1987_v32  ;;  %882 = vmatmul.f32.vlgmr.msra.gmra.mxu0 %v1999_v45  ;;  %v430_v59 = vpop.f32.mrf.mxu3 }
  0xb3   :  { %v371_v58 = vadd.f32 %v370_v54, %v341_v52  ;;  %960 = vmatpush.msra.mxu2 %v923_v40  ;;  %1031 = vmatpush.msrb.mxu0 %v918_v53  ;;  %v919_v60 = vsub.f32 %v917_v49, %v918_v53 }
  0xb4   :  { %963 = vmatmul.f32.vlgmr.msra.gmra.mxu2 %v1979_v24  ;;  %998 = vmatmul.f32.vlgmr.msra.gmra.mxu3 %v1983_v29 }
  0xb5   :  { %v404_v62 = vadd.f32 %v403_v55, %v371_v58  ;;  %1035 = vmatpush.msrb.mxu0 %v924_v50  ;;  %v920_v63 = vand.u32 4294901760, %v919_v60 }
  0xb7   :  { %v431_v5 = vadd.f32 %v430_v59, %v404_v62  ;;  %921 = vmatpush.msra.mxu1 %v920_v63 }
  0xb8   :  { %v345_v4 = vpop.f32.mrf.mxu0 }
  0xb9   :  { %v346_v6 = vadd.f32 %v345_v4, %v315_v2  ;;  %927 = vmatpush.msra.mxu1 %v926_v3  ;;  %v376_v7 = vpop.f32.mrf.mxu1  ;;  %v407_v8 = vpop.f32.mrf.mxu2  ;;  %v1102_v10 = vand.u32 4294901760, %v431_v5 }
  0xba   :  { %890 = vmatmul.f32.gmra.mxu0 %v2016_v0  ;;  %929 = vmatmul.f32.vlgmr.msra.gmra.mxu1 %v1973_v16  ;;  %v434_v12 = vpop.f32.mrf.mxu3 }
  0xbb   :  { %v377_v11 = vadd.f32 %v376_v7, %v346_v6  ;;  %1064 = vmatpush.msrb.mxu1 %v873_v44  ;;  %v1150_v15 = vsub.f32 %v431_v5, %v1102_v10 }
  0xbc   :  { %968 = vmatmul.f32.gmra.mxu2 %v1995_v39  ;;  %1004 = vmatmul.f32.gmra.mxu3 %v2002_v46 }
  0xbd   :  { %v408_v13 = vadd.f32 %v407_v8, %v377_v11  ;;  %1066 = vmatpush.msrb.mxu1 %v1987_v32  ;;  %v1151_v25 = vand.u32 4294901760, %v1150_v15 }
  0xbf   :  { %v435_v17 = vadd.f32 %v434_v12, %v408_v13  ;;  %v1152_v31 = vsub.f32 %v1150_v15, %v1151_v25 }
  0xc0   :  { %v473_v18 = vpop.f32.mrf.mxu0 }
  0xc1   :  { %v1100_v19 = vand.u32 4294901760, %v435_v17  ;;  %v512_v20 = vpop.f32.mrf.mxu1  ;;  %v542_v21 = vpop.f32.mrf.mxu2  ;;  %v1153_v37 = vand.u32 4294901760, %v1152_v31 }
  0xc2   :  { %898 = vmatmul.f32.gmra.mxu0 %v2028_v14  ;;  %933 = vmatmul.f32.gmra.mxu1 %v1985_v30  ;;  %v572_v23 = vpop.f32.mrf.mxu3  ;;  %v513_v26 = vadd.f32 %v512_v20, %v473_v18 }
  0xc3   :  { %v1144_v22 = vsub.f32 %v435_v17, %v1100_v19  ;;  %1101 = vmatpush.msrb.mxu2 %v1100_v19  ;;  %1219 = vmatpush.msra.mxu1 %v1100_v19 }
  0xc4   :  { %973 = vmatmul.f32.gmra.mxu2 %v2012_v57  ;;  %1010 = vmatmul.f32.gmra.mxu3 %v2019_v1  ;;  %v543_v33 = vadd.f32 %v542_v21, %v513_v26 }
  0xc5   :  { %1103 = vmatpush.msrb.mxu2 %v1102_v10  ;;  %1184 = vmatpush.msra.mxu0 %v1144_v22  ;;  %v1145_v27 = vand.u32 4294901760, %v1144_v22 }
  0xc6   :  { %1221 = vmatpush.msra.mxu1 %v1102_v10  ;;  %v573_v40 = vadd.f32 %v572_v23, %v543_v33 }
  0xc7   :  { %1187 = vmatpush.msra.mxu0 %v1150_v15  ;;  %1258 = vmatpush.msra.mxu2 %v1145_v27  ;;  %v1146_v28 = vsub.f32 %v1144_v22, %v1145_v27 }
  0xc8   :  { %v481_v32 = vpop.f32.mrf.mxu0 }
  0xc9   :  { %1262 = vmatpush.msra.mxu2 %v1151_v25  ;;  %v1147_v34 = vand.u32 4294901760, %v1146_v28  ;;  %v516_v35 = vpop.f32.mrf.mxu1  ;;  %v547_v36 = vpop.f32.mrf.mxu2 }
  0xca   :  { %937 = vmatmul.f32.gmra.mxu1 %v2004_v47  ;;  %1037 = vmatmul.f32.vlgmr.msrb.gmra.mxu0 %v1973_v16  ;;  %v578_v38 = vpop.f32.mrf.mxu3  ;;  %v517_v41 = vadd.f32 %v516_v35, %v481_v32 }
  0xcb   :  { %1148 = vmatpush.msrb.mxu3 %v1147_v34 }
  0xcc   :  { %1109 = vmatmul.f32.vlgmr.msrb.gmra.mxu2 %v1999_v45  ;;  %v548_v43 = vadd.f32 %v547_v36, %v517_v41 }
  0xcd   :  { %1154 = vmatpush.msrb.mxu3 %v1153_v37 }
  0xce   :  { %1156 = vmatmul.f32.vlgmr.msrb.gmra.mxu3 %v1973_v16  ;;  %v579_v52 = vadd.f32 %v578_v38, %v548_v43 }
  0xcf   :  { %1291 = vmatpush.msra.mxu3 %v1100_v19 }
  0xd0   :  { %v605_v42 = vpop.f32.mrf.mxu0 }
  0xd1   :  { %v606_v44 = vadd.f32 %v605_v42, %v573_v40  ;;  %1293 = vmatpush.msra.mxu3 %v1102_v10  ;;  %v632_v48 = vpop.f32.mrf.mxu1  ;;  %v675_v49 = vpop.f32.mrf.mxu2 }
  0xd2   :  { %1041 = vmatmul.f32.gmra.mxu0 %v1985_v30  ;;  %1068 = vmatmul.f32.vlgmr.msrb.gmra.mxu1 %v1973_v16  ;;  %v714_v51 = vpop.f32.mrf.mxu3 }
  0xd3   :  { %v633_v50 = vadd.f32 %v632_v48, %v606_v44  ;;  %v715_v62 = vadd.f32 %v714_v51, %v675_v49 }
  0xd4   :  { %1117 = vmatmul.f32.gmra.mxu2 %v2016_v0 }
  0xd5   :  { %v1330_v53 = vand.u32 4294901760, %v633_v50 }
  0xd6   :  { %1160 = vmatmul.f32.gmra.mxu3 %v1985_v30 }
  0xd7   :  { %v1378_v55 = vsub.f32 %v633_v50, %v1330_v53 }
  0xd8   :  { %v609_v54 = vpop.f32.mrf.mxu0 }
  0xd9   :  { %v610_v56 = vadd.f32 %v609_v54, %v579_v52  ;;  %v636_v58 = vpop.f32.mrf.mxu1  ;;  %v683_v59 = vpop.f32.mrf.mxu2  ;;  %v1379_v2 = vand.u32 4294901760, %v1378_v55 }
  0xda   :  { %1045 = vmatmul.f32.gmra.mxu0 %v2004_v47  ;;  %1072 = vmatmul.f32.gmra.mxu1 %v1985_v30  ;;  %v718_v61 = vpop.f32.mrf.mxu3 }
  0xdb   :  { %v637_v60 = vadd.f32 %v636_v58, %v610_v56  ;;  %v1380_v7 = vsub.f32 %v1378_v55, %v1379_v2  ;;  %v719_v13 = vadd.f32 %v718_v61, %v683_v59 }
  0xdc   :  { %1125 = vmatmul.f32.gmra.mxu2 %v2028_v14 }
  0xdd   :  { %v1328_v63 = vand.u32 4294901760, %v637_v60  ;;  %v1381_v18 = vand.u32 4294901760, %v1380_v7 }
  0xde   :  { %1164 = vmatmul.f32.gmra.mxu3 %v2004_v47 }
  0xdf   :  { %v1372_v5 = vsub.f32 %v637_v60, %v1328_v63  ;;  %1329 = vmatpush.msrb.mxu0 %v1328_v63  ;;  %1447 = vmatpush.msrb.mxu3 %v1328_v63 }
  0xe0   :  { %v744_v3 = vpop.f32.mrf.mxu0 }
  0xe1   :  { %v1373_v4 = vand.u32 4294901760, %v1372_v5  ;;  %v745_v6 = vadd.f32 %v744_v3, %v715_v62  ;;  %1412 = vmatpush.msrb.mxu2 %v1372_v5  ;;  %1331 = vmatpush.msrb.mxu0 %v1330_v53  ;;  %v774_v8 = vpop.f32.mrf.mxu1  ;;  %v807_v9 = vpop.f32.mrf.mxu2 }
  0xe2   :  { %1076 = vmatmul.f32.gmra.mxu1 %v2004_v47  ;;  %1190 = vmatmul.f32.vlgmr.msra.gmra.mxu0 %v1979_v24  ;;  %v834_v12 = vpop.f32.mrf.mxu3 }
  0xe3   :  { %v1374_v10 = vsub.f32 %v1372_v5, %v1373_v4  ;;  %v775_v11 = vadd.f32 %v774_v8, %v745_v6  ;;  %1415 = vmatpush.msrb.mxu2 %v1378_v55  ;;  %1449 = vmatpush.msrb.mxu3 %v1330_v53 }
  0xe4   :  { %1486 = vmatpush.msra.mxu0 %v1373_v4  ;;  %1264 = vmatmul.f32.vlgmr.msra.gmra.mxu2 %v1973_v16 }
  0xe5   :  { %v808_v15 = vadd.f32 %v807_v9, %v775_v11  ;;  %v1375_v17 = vand.u32 4294901760, %v1374_v10 }
  0xe6   :  { %1490 = vmatpush.msra.mxu0 %v1379_v2  ;;  %1295 = vmatmul.f32.vlgmr.msra.gmra.mxu3 %v1973_v16 }
  0xe7   :  { %v835_v19 = vadd.f32 %v834_v12, %v808_v15  ;;  %1376 = vmatpush.msrb.mxu1 %v1375_v17 }
  0xe8   :  { %v749_v20 = vpop.f32.mrf.mxu0 }
  0xe9   :  { %v750_v21 = vadd.f32 %v749_v20, %v719_v13  ;;  %1382 = vmatpush.msrb.mxu1 %v1381_v18  ;;  %v1558_v22 = vand.u32 4294901760, %v835_v19  ;;  %v780_v23 = vpop.f32.mrf.mxu1  ;;  %v811_v25 = vpop.f32.mrf.mxu2 }
  0xea   :  { %1195 = vmatmul.f32.gmra.mxu0 %v1995_v39  ;;  %1225 = vmatmul.f32.vlgmr.msra.gmra.mxu1 %v1983_v29  ;;  %v838_v27 = vpop.f32.mrf.mxu3 }
  0xeb   :  { %v781_v26 = vadd.f32 %v780_v23, %v750_v21  ;;  %1519 = vmatpush.msra.mxu1 %v1328_v63  ;;  %v1606_v31 = vsub.f32 %v835_v19, %v1558_v22 }
  0xec   :  { %1268 = vmatmul.f32.gmra.mxu2 %v1985_v30 }
  0xed   :  { %v812_v28 = vadd.f32 %v811_v25, %v781_v26  ;;  %1521 = vmatpush.msra.mxu1 %v1330_v53  ;;  %v1607_v34 = vand.u32 4294901760, %v1606_v31 }
  0xee   :  { %1299 = vmatmul.f32.gmra.mxu3 %v1985_v30 }
  0xef   :  { %v839_v32 = vadd.f32 %v838_v27, %v812_v28  ;;  %v1608_v37 = vsub.f32 %v1606_v31, %v1607_v34 }
  0xf1   :  { %v1556_v33 = vand.u32 4294901760, %v839_v32  ;;  %v1609_v41 = vand.u32 4294901760, %v1608_v37 }
  0xf2   :  { %1200 = vmatmul.f32.gmra.mxu0 %v2012_v57  ;;  %1231 = vmatmul.f32.gmra.mxu1 %v2002_v46 }
  0xf3   :  { %v1600_v35 = vsub.f32 %v839_v32, %v1556_v33  ;;  %1557 = vmatpush.msra.mxu2 %v1556_v33 }
  0xf4   :  { %1272 = vmatmul.f32.gmra.mxu2 %v2004_v47 }
  0xf5   :  { %v1601_v36 = vand.u32 4294901760, %v1600_v35  ;;  %1559 = vmatpush.msra.mxu2 %v1558_v22 }
  0xf6   :  { %1303 = vmatmul.f32.gmra.mxu3 %v2004_v47 }
  0xf7   :  { %v1602_v38 = vsub.f32 %v1600_v35, %v1601_v36 }
  0xf9   :  { %v1603_v40 = vand.u32 4294901760, %v1602_v38 }
  0xfa   :  { %1237 = vmatmul.f32.gmra.mxu1 %v2019_v1  ;;  %1337 = vmatmul.f32.vlgmr.msrb.gmra.mxu0 %v1999_v45 }
  0xfb   :  { %1640 = vmatpush.msrb.mxu0 %v1600_v35  ;;  %1604 = vmatpush.msra.mxu3 %v1603_v40 }
  0xfc   :  { %1418 = vmatmul.f32.vlgmr.msrb.gmra.mxu2 %v1979_v24 }
  0xfd   :  { %1643 = vmatpush.msrb.mxu0 %v1606_v31  ;;  %1714 = vmatpush.msrb.mxu2 %v1601_v36 }
  0xfe   :  { %1610 = vmatpush.msra.mxu3 %v1609_v41 }
  0xff   :  { %1453 = vmatmul.f32.vlgmr.msrb.gmra.mxu3 %v1983_v29  ;;  %1718 = vmatpush.msrb.mxu2 %v1607_v34 }
 0x100   :  { %1747 = vmatpush.msrb.mxu3 %v1556_v33 }
 0x102   :  { %1749 = vmatpush.msrb.mxu3 %v1558_v22  ;;  %1384 = vmatmul.f32.vlgmr.msrb.gmra.mxu1 %v1973_v16 }
 0x103   :  { %1675 = vmatpush.msrb.mxu1 %v1556_v33  ;;  %1345 = vmatmul.f32.gmra.mxu0 %v2016_v0 }
 0x104   :  { %1423 = vmatmul.f32.gmra.mxu2 %v1995_v39 }
 0x105   :  { %1677 = vmatpush.msrb.mxu1 %v1558_v22 }
 0x107   :  { %1459 = vmatmul.f32.gmra.mxu3 %v2002_v46 }
 0x10a   :  { %1388 = vmatmul.f32.gmra.mxu1 %v1985_v30 }
 0x10b   :  { %1353 = vmatmul.f32.gmra.mxu0 %v2028_v14 }
 0x10c   :  { %1428 = vmatmul.f32.gmra.mxu2 %v2012_v57 }
 0x10f   :  { %1465 = vmatmul.f32.gmra.mxu3 %v2019_v1 }
 0x112   :  { %1392 = vmatmul.f32.gmra.mxu1 %v2004_v47 }
 0x113   :  { %1492 = vmatmul.f32.vlgmr.msra.gmra.mxu0 %v1973_v16 }
 0x114   :  { %1565 = vmatmul.f32.vlgmr.msra.gmra.mxu2 %v1999_v45 }
 0x117   :  { %1612 = vmatmul.f32.vlgmr.msra.gmra.mxu3 %v1973_v16 }
 0x11a   :  { %1523 = vmatmul.f32.vlgmr.msra.gmra.mxu1 %v1973_v16 }
 0x11b   :  { %1496 = vmatmul.f32.gmra.mxu0 %v1985_v30 }
 0x11c   :  { %1573 = vmatmul.f32.gmra.mxu2 %v2016_v0 }
 0x11f   :  { %1616 = vmatmul.f32.gmra.mxu3 %v1985_v30 }
 0x122   :  { %1527 = vmatmul.f32.gmra.mxu1 %v1985_v30 }
 0x123   :  { %1500 = vmatmul.f32.gmra.mxu0 %v2004_v47 }
 0x124   :  { %1581 = vmatmul.f32.gmra.mxu2 %v2028_v14 }
 0x127   :  { %1620 = vmatmul.f32.gmra.mxu3 %v2004_v47 }
 0x12a   :  { %1531 = vmatmul.f32.gmra.mxu1 %v2004_v47 }
 0x12b   :  { %1646 = vmatmul.f32.vlgmr.msrb.gmra.mxu0 %v1979_v24 }
 0x12c   :  { %1720 = vmatmul.f32.vlgmr.msrb.gmra.mxu2 %v1973_v16 }
 0x12f   :  { %1751 = vmatmul.f32.vlgmr.msrb.gmra.mxu3 %v1973_v16  ;;  %v883_v45 = vpop.f32.mrf.mxu0 }
 0x132   :  { %1681 = vmatmul.f32.vlgmr.msrb.gmra.mxu1 %v1983_v29 }
 0x133   :  { %1651 = vmatmul.f32.gmra.mxu0 %v1995_v39 }
 0x134   :  { %1724 = vmatmul.f32.gmra.mxu2 %v1985_v30 }
 0x137   :  { %v930_v0 = vpop.f32.mrf.mxu1  ;;  %1755 = vmatmul.f32.gmra.mxu3 %v1985_v30  ;;  %v964_v14 = vpop.f32.mrf.mxu2 }
 0x138   :  { %v999_v42 = vpop.f32.mrf.mxu3  ;;  %v891_v43 = vpop.f32.mrf.mxu0  ;;  %v931_v44 = vadd.f32 %v930_v0, %v883_v45 }
 0x13a   :  { %1687 = vmatmul.f32.gmra.mxu1 %v2002_v46  ;;  %v965_v49 = vadd.f32 %v964_v14, %v931_v44 }
 0x13b   :  { %1656 = vmatmul.f32.gmra.mxu0 %v2012_v57 }
 0x13c   :  { %1728 = vmatmul.f32.gmra.mxu2 %v2004_v47  ;;  %v1000_v52 = vadd.f32 %v999_v42, %v965_v49 }
 0x13f   :  { %v934_v16 = vpop.f32.mrf.mxu1  ;;  %1759 = vmatmul.f32.gmra.mxu3 %v2004_v47  ;;  %v969_v24 = vpop.f32.mrf.mxu2 }
 0x140   :  { %v1005_v29 = vpop.f32.mrf.mxu3  ;;  %v899_v39 = vpop.f32.mrf.mxu0  ;;  %v935_v46 = vadd.f32 %v934_v16, %v891_v43 }
 0x142   :  { %1693 = vmatmul.f32.gmra.mxu1 %v2019_v1  ;;  %v970_v55 = vadd.f32 %v969_v24, %v935_v46 }
 0x144   :  { %v1006_v59 = vadd.f32 %v1005_v29, %v970_v55 }
 0x147   :  { %v938_v48 = vpop.f32.mrf.mxu1  ;;  %v974_v30 = vpop.f32.mrf.mxu2 }
 0x148   :  { %v1011_v50 = vpop.f32.mrf.mxu3  ;;  %v1038_v51 = vpop.f32.mrf.mxu0  ;;  %v939_v60 = vadd.f32 %v938_v48, %v899_v39 }
 0x149   :  { %v1039_v53 = vadd.f32 %v1038_v51, %v1000_v52 }
 0x14a   :  { %v975_v63 = vadd.f32 %v974_v30, %v939_v60 }
 0x14c   :  { %v1012_v4 = vadd.f32 %v1011_v50, %v975_v63 }
 0x14f   :  { %v1069_v57 = vpop.f32.mrf.mxu1  ;;  %v1110_v54 = vpop.f32.mrf.mxu2 }
 0x150   :  { %v1070_v56 = vadd.f32 %v1069_v57, %v1039_v53  ;;  %v1042_v58 = vpop.f32.mrf.mxu0 }
 0x151   :  { %v1157_v47 = vpop.f32.mrf.mxu3  ;;  %v1043_v61 = vadd.f32 %v1042_v58, %v1006_v59 }
 0x152   :  { %1080 = vst [vmem:[#allocation6] sm:$0xff] %v1070_v56  ;;  %v1158_v12 = vadd.f32 %v1157_v47, %v1110_v54 }
 0x157   :  { %v1073_v1 = vpop.f32.mrf.mxu1  ;;  %v1118_v62 = vpop.f32.mrf.mxu2 }
 0x158   :  { %v1074_v2 = vadd.f32 %v1073_v1, %v1043_v61  ;;  %v1046_v5 = vpop.f32.mrf.mxu0 }
 0x159   :  { %v1161_v3 = vpop.f32.mrf.mxu3  ;;  %v1047_v6 = vadd.f32 %v1046_v5, %v1012_v4 }
 0x15a   :  { %1081 = vst [vmem:[#allocation6 + $0x8] sm:$0xff] %v1074_v2  ;;  %v1162_v22 = vadd.f32 %v1161_v3, %v1118_v62 }
 0x15f   :  { %v1077_v7 = vpop.f32.mrf.mxu1  ;;  %v1126_v8 = vpop.f32.mrf.mxu2 }
 0x160   :  { %v1078_v9 = vadd.f32 %v1077_v7, %v1047_v6  ;;  %v1191_v10 = vpop.f32.mrf.mxu0 }
 0x161   :  { %v1165_v11 = vpop.f32.mrf.mxu3  ;;  %v1192_v13 = vadd.f32 %v1191_v10, %v1158_v12 }
 0x162   :  { %1082 = vst [vmem:[#allocation6 + $0x10] sm:$0xff] %v1078_v9  ;;  %v1166_v34 = vadd.f32 %v1165_v11, %v1126_v8 }
 0x167   :  { %v1226_v15 = vpop.f32.mrf.mxu1  ;;  %v1265_v17 = vpop.f32.mrf.mxu2 }
 0x168   :  { %v1227_v18 = vadd.f32 %v1226_v15, %v1192_v13  ;;  %v1196_v19 = vpop.f32.mrf.mxu0 }
 0x169   :  { %v1296_v20 = vpop.f32.mrf.mxu3  ;;  %v1197_v25 = vadd.f32 %v1196_v19, %v1162_v22 }
 0x16a   :  { %v1266_v21 = vadd.f32 %v1265_v17, %v1227_v18 }
 0x16c   :  { %v1297_v23 = vadd.f32 %v1296_v20, %v1266_v21 }
 0x16e   :  { %1308 = vst [vmem:[#allocation6 + $0x18] sm:$0xff] %v1297_v23 }
 0x16f   :  { %v1232_v26 = vpop.f32.mrf.mxu1  ;;  %v1269_v27 = vpop.f32.mrf.mxu2 }
 0x170   :  { %v1233_v28 = vadd.f32 %v1232_v26, %v1197_v25  ;;  %v1201_v31 = vpop.f32.mrf.mxu0 }
 0x171   :  { %v1300_v32 = vpop.f32.mrf.mxu3  ;;  %v1202_v36 = vadd.f32 %v1201_v31, %v1166_v34 }
 0x172   :  { %v1270_v33 = vadd.f32 %v1269_v27, %v1233_v28 }
 0x174   :  { %v1301_v35 = vadd.f32 %v1300_v32, %v1270_v33 }
 0x176   :  { %1309 = vst [vmem:[#allocation6 + $0x20] sm:$0xff] %v1301_v35 }
 0x177   :  { %v1238_v37 = vpop.f32.mrf.mxu1  ;;  %v1273_v38 = vpop.f32.mrf.mxu2 }
 0x178   :  { %v1239_v40 = vadd.f32 %v1238_v37, %v1202_v36  ;;  %v1338_v41 = vpop.f32.mrf.mxu0 }
 0x179   :  { %v1304_v45 = vpop.f32.mrf.mxu3 }
 0x17a   :  { %v1274_v0 = vadd.f32 %v1273_v38, %v1239_v40 }
 0x17c   :  { %v1305_v14 = vadd.f32 %v1304_v45, %v1274_v0 }
 0x17e   :  { %1310 = vst [vmem:[#allocation6 + $0x28] sm:$0xff] %v1305_v14 }
 0x17f   :  { %v1385_v42 = vpop.f32.mrf.mxu1  ;;  %v1419_v43 = vpop.f32.mrf.mxu2 }
 0x180   :  { %v1346_v16 = vpop.f32.mrf.mxu0  ;;  %v1386_v30 = vadd.f32 %v1385_v42, %v1338_v41 }
 0x182   :  { %v1454_v24 = vpop.f32.mrf.mxu3  ;;  %v1420_v51 = vadd.f32 %v1419_v43, %v1386_v30 }
 0x184   :  { %v1455_v53 = vadd.f32 %v1454_v24, %v1420_v51 }
 0x187   :  { %v1389_v29 = vpop.f32.mrf.mxu1  ;;  %v1424_v39 = vpop.f32.mrf.mxu2 }
 0x188   :  { %v1354_v44 = vpop.f32.mrf.mxu0  ;;  %v1390_v57 = vadd.f32 %v1389_v29, %v1346_v16 }
 0x18a   :  { %v1460_v48 = vpop.f32.mrf.mxu3  ;;  %v1425_v58 = vadd.f32 %v1424_v39, %v1390_v57 }
 0x18c   :  { %v1461_v61 = vadd.f32 %v1460_v48, %v1425_v58 }
 0x18f   :  { %v1393_v49 = vpop.f32.mrf.mxu1  ;;  %v1429_v50 = vpop.f32.mrf.mxu2 }
 0x190   :  { %v1493_v52 = vpop.f32.mrf.mxu0  ;;  %v1394_v1 = vadd.f32 %v1393_v49, %v1354_v44 }
 0x191   :  { %v1494_v54 = vadd.f32 %v1493_v52, %v1455_v53 }
 0x192   :  { %v1466_v46 = vpop.f32.mrf.mxu3  ;;  %v1430_v5 = vadd.f32 %v1429_v50, %v1394_v1 }
 0x194   :  { %v1467_v7 = vadd.f32 %v1466_v46, %v1430_v5 }
 0x197   :  { %v1524_v55 = vpop.f32.mrf.mxu1  ;;  %v1566_v56 = vpop.f32.mrf.mxu2 }
 0x198   :  { %v1525_v47 = vadd.f32 %v1524_v55, %v1494_v54  ;;  %v1497_v59 = vpop.f32.mrf.mxu0 }
 0x199   :  { %v1498_v62 = vadd.f32 %v1497_v59, %v1461_v61 }
 0x19a   :  { %1536 = vst [vmem:[#allocation6 + $0x30] sm:$0xff] %v1525_v47  ;;  %v1613_v60 = vpop.f32.mrf.mxu3 }
 0x19b   :  { %v1614_v15 = vadd.f32 %v1613_v60, %v1566_v56 }
 0x19f   :  { %v1528_v63 = vpop.f32.mrf.mxu1  ;;  %v1574_v2 = vpop.f32.mrf.mxu2 }
 0x1a0   :  { %v1529_v3 = vadd.f32 %v1528_v63, %v1498_v62  ;;  %v1501_v4 = vpop.f32.mrf.mxu0 }
 0x1a1   :  { %v1502_v8 = vadd.f32 %v1501_v4, %v1467_v7 }
 0x1a2   :  { %1537 = vst [vmem:[#allocation6 + $0x38] sm:$0xff] %v1529_v3  ;;  %v1617_v6 = vpop.f32.mrf.mxu3 }
 0x1a3   :  { %v1618_v25 = vadd.f32 %v1617_v6, %v1574_v2 }
 0x1a7   :  { %v1532_v9 = vpop.f32.mrf.mxu1  ;;  %v1582_v10 = vpop.f32.mrf.mxu2 }
 0x1a8   :  { %v1533_v11 = vadd.f32 %v1532_v9, %v1502_v8  ;;  %v1647_v12 = vpop.f32.mrf.mxu0 }
 0x1a9   :  { %v1648_v17 = vadd.f32 %v1647_v12, %v1614_v15 }
 0x1aa   :  { %1538 = vst [vmem:[#allocation6 + $0x40] sm:$0xff] %v1533_v11  ;;  %v1621_v13 = vpop.f32.mrf.mxu3 }
 0x1ab   :  { %v1622_v36 = vadd.f32 %v1621_v13, %v1582_v10 }
 0x1af   :  { %v1682_v18 = vpop.f32.mrf.mxu1  ;;  %v1721_v19 = vpop.f32.mrf.mxu2 }
 0x1b0   :  { %v1683_v20 = vadd.f32 %v1682_v18, %v1648_v17  ;;  %v1652_v21 = vpop.f32.mrf.mxu0 }
 0x1b1   :  { %v1653_v27 = vadd.f32 %v1652_v21, %v1618_v25 }
 0x1b2   :  { %v1722_v22 = vadd.f32 %v1721_v19, %v1683_v20  ;;  %v1752_v23 = vpop.f32.mrf.mxu3 }
 0x1b4   :  { %v1753_v26 = vadd.f32 %v1752_v23, %v1722_v22 }
 0x1b6   :  { %1764 = vst [vmem:[#allocation6 + $0x48] sm:$0xff] %v1753_v26 }
 0x1b7   :  { %v1688_v28 = vpop.f32.mrf.mxu1  ;;  %v1725_v31 = vpop.f32.mrf.mxu2 }
 0x1b8   :  { %v1689_v32 = vadd.f32 %v1688_v28, %v1653_v27  ;;  %v1657_v35 = vpop.f32.mrf.mxu0 }
 0x1b9   :  { %v1658_v38 = vadd.f32 %v1657_v35, %v1622_v36 }
 0x1ba   :  { %v1726_v33 = vadd.f32 %v1725_v31, %v1689_v32  ;;  %v1756_v34 = vpop.f32.mrf.mxu3 }
 0x1bc   :  { %v1757_v37 = vadd.f32 %v1756_v34, %v1726_v33 }
 0x1be   :  { %1765 = vst [vmem:[#allocation6 + $0x50] sm:$0xff] %v1757_v37 }
 0x1bf   :  { %v1694_v40 = vpop.f32.mrf.mxu1  ;;  %v1729_v41 = vpop.f32.mrf.mxu2 }
 0x1c0   :  { %v1695_v45 = vadd.f32 %v1694_v40, %v1658_v38 }
 0x1c2   :  { %v1730_v0 = vadd.f32 %v1729_v41, %v1695_v45  ;;  %v1760_v14 = vpop.f32.mrf.mxu3 }
 0x1c4   :  { %v1761_v42 = vadd.f32 %v1760_v14, %v1730_v0 }
 0x1c6   :  { %1766 = vst [vmem:[#allocation6 + $0x58] sm:$0xff] %v1761_v42 }
 0x1c7   :  { %1779 = dma.vmem_to_hbm [thread:$0]  %s1772_s27, 1536, %s1774_s30, [#allocation5], %s1843_s17, %s1843_s17, %s1844_s18  }
 0x1c8   :  { %1840 = dma.done.wait [#allocation5], 1536  }
 0x1c9   :  { %1841 = vsyncadd [#allocation5], 4294965760 }
 0x1ca   :  { %1784 = vsyncpa [#allocation4], 1 }
 0x1cb   :  { %1785 = vsyncpa [#allocation5], 1 }

</bundles_post_ra>
